<compile_context>
chip_gen: v7x
topology: tpu7x:2x2x1
jax: 0.10.0
libtpu: 0.0.40
codegen_flags: <defaults>
</compile_context>

<pallas_src>
import functools

import jax
import jax.numpy as jnp
from jax.experimental import pallas as pl
from jax.experimental.pallas import tpu as pltpu

# ----------------------------- "args" config --------------------------------
IN_DIM = 32            # in_dim
REL_HIDDEN_DIM = 32    # args.rel_hidden_dim
REL_NORM = True        # args.rel_norm
TOTAL_TASKS = 8
TRAIN_TASKS = 4
NUM_LAYER = 2          # GNN layers (see TODO below)


# ------------------------------ Pallas kernel --------------------------------
def _fused_kernel(x_ref, t_ref, w_ref, bw_ref, ga_ref, gb_ref,
                  w1a_ref, w1b_ref, b1_ref, w2_ref, b2_ref,
                  logit_ref, graph_ref, nodes_ref,
                  *, n_task, n_per, S, rel_norm):
    f32 = jnp.float32
    w = w_ref[...]
    bw = bw_ref[...]

    # fc1 on sample rows and on the task embeddings (MXU)
    x_h = jnp.dot(x_ref[...], w, preferred_element_type=f32) + bw   # [N*S, H]
    t_h = jnp.dot(t_ref[...], w, preferred_element_type=f32) + bw   # [n_task, H]
    # pre_dropout / dropout are 0 (eval) -> no-op.

    # assemble node matrix in VMEM: node 0 of each sub-graph is its task emb,
    # nodes 1..S are the fc1-projected samples of that sub-graph.
    for g in range(n_task * n_per):
        t = g // n_per
        base = g * (S + 1)
        nodes_ref[base:base + 1, :] = t_h[t:t + 1, :]
        nodes_ref[base + 1:base + 1 + S, :] = x_h[g * S:(g + 1) * S, :]
    nodes = nodes_ref[...]                                           # [num_nodes, H]

    # TODO(synk): HMRGNN (self.GNN) is not defined in the provided source; the
    # relational message-passing stage is passed through unchanged here.

    # pair-endpoint gather via one-hot matmuls (support pairs then query pairs)
    a = jnp.dot(ga_ref[...], nodes, preferred_element_type=f32)      # [P_pad, H]
    b = jnp.dot(gb_ref[...], nodes, preferred_element_type=f32)      # [P_pad, H]

    if rel_norm:
        # F.normalize(x, 2, -1) == x / max(||x||, 1e-12) == x * rsqrt(max(||x||^2, 1e-24))
        a = a * jax.lax.rsqrt(jnp.maximum(jnp.sum(a * a, axis=-1, keepdims=True), 1e-24))
        b = b * jax.lax.rsqrt(jnp.maximum(jnp.sum(b * b, axis=-1, keepdims=True), 1e-24))

    # concat([a, b], -1) @ W1 == a @ W1[:H] + b @ W1[H:]
    h = (jnp.dot(a, w1a_ref[...], preferred_element_type=f32)
         + jnp.dot(b, w1b_ref[...], preferred_element_type=f32)
         + b1_ref[...])
    h = jnp.maximum(h, 0.0)                                          # ReLU

    # final Linear(H, 1): VPU lane-reduction instead of a 1-column MXU matmul
    logit_ref[...] = jnp.sum(h * w2_ref[...], axis=-1, keepdims=True) + b2_ref[...]

    # graph embedding: mean over sub-graphs; task node + mean of sample nodes
    inv_p = 1.0 / n_per
    inv_ps = 1.0 / (n_per * S)
    for t in range(n_task):
        acc_t = jnp.zeros((1, nodes.shape[1]), f32)
        acc_s = jnp.zeros((1, nodes.shape[1]), f32)
        for p in range(n_per):
            base = (t * n_per + p) * (S + 1)
            acc_t = acc_t + nodes[base:base + 1, :]
            acc_s = acc_s + jnp.sum(nodes[base + 1:base + 1 + S, :],
                                    axis=0, keepdims=True)
        graph_ref[t:t + 1, :] = acc_t * inv_p + acc_s * inv_ps


def _full_spec(shape):
    return pl.BlockSpec(shape, lambda: (0,) * len(shape))


def _fused_forward(params, x_flat, t_in, ga, gb, *, n_task, n_per, S, rel_norm):
    H = params["fc1_w"].shape[1]
    D = params["fc1_w"].shape[0]
    num_nodes = n_task * n_per * (S + 1)
    NS = x_flat.shape[0]
    P_pad = ga.shape[0]

    kern = functools.partial(_fused_kernel, n_task=n_task, n_per=n_per,
                             S=S, rel_norm=rel_norm)
    return pl.pallas_call(
        kern,
        out_shape=(jax.ShapeDtypeStruct((P_pad, 1), jnp.float32),
                   jax.ShapeDtypeStruct((n_task, H), jnp.float32)),
        in_specs=[
            _full_spec((NS, D)),            # x_flat
            _full_spec((n_task, D)),        # task embeddings
            _full_spec((D, H)),             # fc1_w
            _full_spec((1, H)),             # fc1_b
            _full_spec((P_pad, num_nodes)),  # gather one-hot (endpoint a)
            _full_spec((P_pad, num_nodes)),  # gather one-hot (endpoint b)
            _full_spec((H, H)),             # cls_w1a
            _full_spec((H, H)),             # cls_w1b
            _full_spec((1, H)),             # cls_b1
            _full_spec((1, H)),             # cls_w2 (row)
            _full_spec((1, 1)),             # cls_b2
        ],
        out_specs=(_full_spec((P_pad, 1)), _full_spec((n_task, H))),
        scratch_shapes=[pltpu.VMEM((num_nodes, H), jnp.float32)],
    )(x_flat, t_in, params["fc1_w"], params["fc1_b"], ga, gb,
      params["cls_w1a"], params["cls_w1b"], params["cls_b1"],
      params["cls_w2_row"], params["cls_b2"])


# ------------------------------ parameters -----------------------------------
def _uniform(key, shape, fan_in):
    bound = 1.0 / jnp.sqrt(jnp.asarray(fan_in, jnp.float32))
    return jax.random.uniform(key, shape, jnp.float32, -bound, bound)


def init_params(key):
    ks = jax.random.split(key, 8)
    H = REL_HIDDEN_DIM
    task_emb = jax.random.normal(ks[0], (TOTAL_TASKS, IN_DIM), jnp.float32)
    # self.task_emb.weight.data[train_tasks:, :] = 0
    task_emb = task_emb.at[TRAIN_TASKS:, :].set(0.0)
    cls_w1 = _uniform(ks[3], (2 * H, H), 2 * H)
    return {
        "task_emb": task_emb,
        "fc1_w": _uniform(ks[1], (IN_DIM, H), IN_DIM),
        "fc1_b": _uniform(ks[2], (H,), IN_DIM).reshape(1, H),
        # classifier weights pre-split / pre-reshaped so nothing is sliced per call
        "cls_w1a": cls_w1[:H, :],
        "cls_w1b": cls_w1[H:, :],
        "cls_b1": _uniform(ks[4], (H,), 2 * H).reshape(1, H),
        "cls_w2_row": _uniform(ks[5], (H, 1), H).reshape(1, H),
        "cls_b2": _uniform(ks[6], (1,), H).reshape(1, 1),
    }


# ------------------------------ forward pass ----------------------------------
def forward_inductive(params, x, edge_index, edge_w, edge_type, tasks,
                      tgt_s_idx, tgt_q_idx, n_s, n_q):
    """Mirrors TaskRelationNet.forward_inductive.

    x: [N, S, in_dim] sample embeddings (N = n_task * n_per sub-graphs, S nodes each)
    tasks: [n_task] int task ids
    tgt_s_idx / tgt_q_idx: [2, *] node-index pairs into the (S+1)-node sub-graph
    Returns (support_logit [n_q*n_s, 1], query_logit [n_q, 1], graph_emb [n_task, H]).
    """
    n_task = tasks.shape[0]
    N, S, D = x.shape
    n_per = N // n_task
    num_nodes = N * (S + 1)

    n_pair_s = tgt_s_idx.shape[1]
    n_pair_q = tgt_q_idx.shape[1]
    P_s = N * n_pair_s
    P_q = N * n_pair_q
    P = P_s + P_q
    assert P_s == n_q * n_s and P_q == n_q, \
        "pair counts inconsistent with n_s / n_q (would silently mis-shape in torch)"
    P_pad = max(8, -(-P // 8) * 8)   # pad pair batch to a sublane multiple

    # flat node-row indices of the pair endpoints (support pairs first, then query)
    sub_base = (jnp.arange(N, dtype=jnp.int32) * (S + 1))[:, None]        # [N,1]
    idx_a = jnp.concatenate([(sub_base + tgt_s_idx[0][None, :]).reshape(-1),
                             (sub_base + tgt_q_idx[0][None, :]).reshape(-1)])
    idx_b = jnp.concatenate([(sub_base + tgt_s_idx[1][None, :]).reshape(-1),
                             (sub_base + tgt_q_idx[1][None, :]).reshape(-1)])
    pad = jnp.full((P_pad - P,), -1, jnp.int32)                           # -1 -> zero row
    node_iota = jnp.arange(num_nodes, dtype=jnp.int32)[None, :]
    ga = (jnp.concatenate([idx_a, pad])[:, None] == node_iota).astype(jnp.float32)
    gb = (jnp.concatenate([idx_b, pad])[:, None] == node_iota).astype(jnp.float32)

    x_flat = x.reshape(N * S, D)
    t_in = params["task_emb"][tasks]                                      # [n_task, in_dim]

    logits, graph_emb = _fused_forward(params, x_flat, t_in, ga, gb,
                                       n_task=n_task, n_per=n_per, S=S,
                                       rel_norm=REL_NORM)

    support_logit = logits[:P_s]          # [n_q*n_s, 1]
    query_logit = logits[P_s:P]           # [n_q, 1]
    return support_logit, query_logit, graph_emb


# ---------------------------------- main --------------------------------------
if __name__ == "__main__":
    key = jax.random.PRNGKey(0)
    k_param, k_x = jax.random.split(key)

    params = init_params(k_param)

    n_task, n_per, S = 2, 2, 7            # N = 4 sub-graphs, 8 nodes each (task node + 7)
    N = n_task * n_per
    x = jax.random.normal(k_x, (N, S, IN_DIM), jnp.float32)
    tasks = jnp.array([0, 1], dtype=jnp.int32)

    # pair indices into the (S+1)=8 node sub-graphs
    tgt_s_idx = jnp.array([[1, 2, 3, 4],
                           [5, 6, 7, 1]], dtype=jnp.int32)    # [2, 4]
    tgt_q_idx = jnp.array([[0],
                           [3]], dtype=jnp.int32)             # [2, 1]
    n_s, n_q = 4, 4                       # n_q*n_s == n_task*n_per*tgt_s_idx.shape[1]

    # graph connectivity placeholders (only consumed by the unavailable HMRGNN)
    edge_index = jnp.zeros((2, 8), dtype=jnp.int32)
    edge_w = jnp.zeros((8, 2), dtype=jnp.float32)
    edge_type = jnp.zeros((8,), dtype=jnp.int32)

    fwd = jax.jit(forward_inductive, static_argnames=("n_s", "n_q"))
    support_logit, query_logit, graph_emb = fwd(
        params, x, edge_index, edge_w, edge_type, tasks,
        tgt_s_idx, tgt_q_idx, n_s=n_s, n_q=n_q)

    jax.block_until_ready((support_logit, query_logit, graph_emb))
    assert support_logit.shape == (n_q * n_s, 1)
    assert query_logit.shape == (n_q, 1)
    assert graph_emb.shape == (n_task, REL_HIDDEN_DIM)
    print("KERNEL_OK")
</pallas_src>

<mosaic_0001>
module attributes {stable_mosaic.version = 11 : i64} {
  func.func @_fused_kernel(%arg0: memref<28x32xf32, #tpu.memory_space<vmem>>, %arg1: memref<2x32xf32, #tpu.memory_space<vmem>>, %arg2: memref<32x32xf32, #tpu.memory_space<vmem>>, %arg3: memref<1x32xf32, #tpu.memory_space<vmem>>, %arg4: memref<24x32xf32, #tpu.memory_space<vmem>>, %arg5: memref<24x32xf32, #tpu.memory_space<vmem>>, %arg6: memref<32x32xf32, #tpu.memory_space<vmem>>, %arg7: memref<32x32xf32, #tpu.memory_space<vmem>>, %arg8: memref<1x32xf32, #tpu.memory_space<vmem>>, %arg9: memref<1x32xf32, #tpu.memory_space<vmem>>, %arg10: memref<1x1xf32, #tpu.memory_space<vmem>>, %arg11: memref<24x1xf32, #tpu.memory_space<vmem>>, %arg12: memref<2x32xf32, #tpu.memory_space<vmem>>, %arg13: memref<32x32xf32, #tpu.memory_space<vmem>>) attributes {dimension_semantics = [], scalar_prefetch = 0 : i64, scratch_operands = 1 : i64, tpu.core_type = #tpu.core_type<tc>} {
    %c0 = arith.constant 0 : index
    %c0_0 = arith.constant 0 : index
    %0 = vector.load %arg2[%c0, %c0_0] : memref<32x32xf32, #tpu.memory_space<vmem>>, vector<32x32xf32>
    %c0_1 = arith.constant 0 : index
    %c0_2 = arith.constant 0 : index
    %1 = vector.load %arg3[%c0_1, %c0_2] : memref<1x32xf32, #tpu.memory_space<vmem>>, vector<1x32xf32>
    %c0_3 = arith.constant 0 : index
    %c0_4 = arith.constant 0 : index
    %2 = vector.load %arg0[%c0_3, %c0_4] : memref<28x32xf32, #tpu.memory_space<vmem>>, vector<28x32xf32>
    %cst = arith.constant dense<0.000000e+00> : vector<28x32xf32>
    %3 = tpu.matmul %2, %0, %cst {dimension_numbers = #tpu.dot_dimension_numbers<[1], [0], [0], [1], [0, 0, 1, 1], [], []>} : vector<28x32xf32>, vector<32x32xf32>, vector<28x32xf32> -> vector<28x32xf32>
    %4 = vector.broadcast %1 : vector<1x32xf32> to vector<28x32xf32>
    %5 = arith.addf %3, %4 : vector<28x32xf32>
    %c0_5 = arith.constant 0 : index
    %c0_6 = arith.constant 0 : index
    %6 = vector.load %arg1[%c0_5, %c0_6] : memref<2x32xf32, #tpu.memory_space<vmem>>, vector<2x32xf32>
    %cst_7 = arith.constant dense<0.000000e+00> : vector<2x32xf32>
    %7 = tpu.matmul %6, %0, %cst_7 {dimension_numbers = #tpu.dot_dimension_numbers<[1], [0], [0], [1], [0, 0, 1, 1], [], []>} : vector<2x32xf32>, vector<32x32xf32>, vector<2x32xf32> -> vector<2x32xf32>
    %8 = vector.broadcast %1 : vector<1x32xf32> to vector<2x32xf32>
    %9 = arith.addf %7, %8 : vector<2x32xf32>
    %10 = vector.extract_strided_slice %9 {offsets = [0, 0], sizes = [1, 32], strides = [1, 1]} : vector<2x32xf32> to vector<1x32xf32>
    %c0_8 = arith.constant 0 : index
    %c0_9 = arith.constant 0 : index
    %11 = vector.load %arg13[%c0_8, %c0_9] : memref<32x32xf32, #tpu.memory_space<vmem>>, vector<1x32xf32>
    tpu.vector_store %arg13[%c0_8, %c0_9], %10 {strides = array<i32>} : memref<32x32xf32, #tpu.memory_space<vmem>>, vector<1x32xf32>,
    %12 = vector.extract_strided_slice %5 {offsets = [0, 0], sizes = [7, 32], strides = [1, 1]} : vector<28x32xf32> to vector<7x32xf32>
    %c1 = arith.constant 1 : index
    %c0_10 = arith.constant 0 : index
    %13 = vector.load %arg13[%c1, %c0_10] : memref<32x32xf32, #tpu.memory_space<vmem>>, vector<7x32xf32>
    tpu.vector_store %arg13[%c1, %c0_10], %12 {strides = array<i32>} : memref<32x32xf32, #tpu.memory_space<vmem>>, vector<7x32xf32>,
    %14 = vector.extract_strided_slice %9 {offsets = [0, 0], sizes = [1, 32], strides = [1, 1]} : vector<2x32xf32> to vector<1x32xf32>
    %c8 = arith.constant 8 : index
    %c0_11 = arith.constant 0 : index
    %15 = vector.load %arg13[%c8, %c0_11] : memref<32x32xf32, #tpu.memory_space<vmem>>, vector<1x32xf32>
    tpu.vector_store %arg13[%c8, %c0_11], %14 {strides = array<i32>} : memref<32x32xf32, #tpu.memory_space<vmem>>, vector<1x32xf32>,
    %16 = vector.extract_strided_slice %5 {offsets = [7, 0], sizes = [7, 32], strides = [1, 1]} : vector<28x32xf32> to vector<7x32xf32>
    %c9 = arith.constant 9 : index
    %c0_12 = arith.constant 0 : index
    %17 = vector.load %arg13[%c9, %c0_12] : memref<32x32xf32, #tpu.memory_space<vmem>>, vector<7x32xf32>
    tpu.vector_store %arg13[%c9, %c0_12], %16 {strides = array<i32>} : memref<32x32xf32, #tpu.memory_space<vmem>>, vector<7x32xf32>,
    %18 = vector.extract_strided_slice %9 {offsets = [1, 0], sizes = [1, 32], strides = [1, 1]} : vector<2x32xf32> to vector<1x32xf32>
    %c16 = arith.constant 16 : index
    %c0_13 = arith.constant 0 : index
    %19 = vector.load %arg13[%c16, %c0_13] : memref<32x32xf32, #tpu.memory_space<vmem>>, vector<1x32xf32>
    tpu.vector_store %arg13[%c16, %c0_13], %18 {strides = array<i32>} : memref<32x32xf32, #tpu.memory_space<vmem>>, vector<1x32xf32>,
    %20 = vector.extract_strided_slice %5 {offsets = [14, 0], sizes = [7, 32], strides = [1, 1]} : vector<28x32xf32> to vector<7x32xf32>
    %c17 = arith.constant 17 : index
    %c0_14 = arith.constant 0 : index
    %21 = vector.load %arg13[%c17, %c0_14] : memref<32x32xf32, #tpu.memory_space<vmem>>, vector<7x32xf32>
    tpu.vector_store %arg13[%c17, %c0_14], %20 {strides = array<i32>} : memref<32x32xf32, #tpu.memory_space<vmem>>, vector<7x32xf32>,
    %22 = vector.extract_strided_slice %9 {offsets = [1, 0], sizes = [1, 32], strides = [1, 1]} : vector<2x32xf32> to vector<1x32xf32>
    %c24 = arith.constant 24 : index
    %c0_15 = arith.constant 0 : index
    %23 = vector.load %arg13[%c24, %c0_15] : memref<32x32xf32, #tpu.memory_space<vmem>>, vector<1x32xf32>
    tpu.vector_store %arg13[%c24, %c0_15], %22 {strides = array<i32>} : memref<32x32xf32, #tpu.memory_space<vmem>>, vector<1x32xf32>,
    %24 = vector.extract_strided_slice %5 {offsets = [21, 0], sizes = [7, 32], strides = [1, 1]} : vector<28x32xf32> to vector<7x32xf32>
    %c25 = arith.constant 25 : index
    %c0_16 = arith.constant 0 : index
    %25 = vector.load %arg13[%c25, %c0_16] : memref<32x32xf32, #tpu.memory_space<vmem>>, vector<7x32xf32>
    tpu.vector_store %arg13[%c25, %c0_16], %24 {strides = array<i32>} : memref<32x32xf32, #tpu.memory_space<vmem>>, vector<7x32xf32>,
    %c0_17 = arith.constant 0 : index
    %c0_18 = arith.constant 0 : index
    %26 = vector.load %arg13[%c0_17, %c0_18] : memref<32x32xf32, #tpu.memory_space<vmem>>, vector<32x32xf32>
    %c0_19 = arith.constant 0 : index
    %c0_20 = arith.constant 0 : index
    %27 = vector.load %arg4[%c0_19, %c0_20] : memref<24x32xf32, #tpu.memory_space<vmem>>, vector<24x32xf32>
    %cst_21 = arith.constant dense<0.000000e+00> : vector<24x32xf32>
    %28 = tpu.matmul %27, %26, %cst_21 {dimension_numbers = #tpu.dot_dimension_numbers<[1], [0], [0], [1], [0, 0, 1, 1], [], []>} : vector<24x32xf32>, vector<32x32xf32>, vector<24x32xf32> -> vector<24x32xf32>
    %c0_22 = arith.constant 0 : index
    %c0_23 = arith.constant 0 : index
    %29 = vector.load %arg5[%c0_22, %c0_23] : memref<24x32xf32, #tpu.memory_space<vmem>>, vector<24x32xf32>
    %cst_24 = arith.constant dense<0.000000e+00> : vector<24x32xf32>
    %30 = tpu.matmul %29, %26, %cst_24 {dimension_numbers = #tpu.dot_dimension_numbers<[1], [0], [0], [1], [0, 0, 1, 1], [], []>} : vector<24x32xf32>, vector<32x32xf32>, vector<24x32xf32> -> vector<24x32xf32>
    %31 = arith.mulf %28, %28 : vector<24x32xf32>
    %cst_25 = arith.constant dense<0.000000e+00> : vector<24xf32>
    %32 = vector.multi_reduction <add>, %31, %cst_25 [1] : vector<24x32xf32> to vector<24xf32>
    %33 = vector.shape_cast %32 : vector<24xf32> to vector<24x1xf32>
    %cst_26 = arith.constant 1.000000e-24 : f32
    %34 = vector.broadcast %cst_26 : f32 to vector<24x1xf32>
    %35 = arith.maximumf %33, %34 : vector<24x1xf32>
    %36 = math.rsqrt %35 : vector<24x1xf32>
    %37 = vector.broadcast %36 : vector<24x1xf32> to vector<24x32xf32>
    %38 = arith.mulf %28, %37 : vector<24x32xf32>
    %39 = arith.mulf %30, %30 : vector<24x32xf32>
    %cst_27 = arith.constant dense<0.000000e+00> : vector<24xf32>
    %40 = vector.multi_reduction <add>, %39, %cst_27 [1] : vector<24x32xf32> to vector<24xf32>
    %41 = vector.shape_cast %40 : vector<24xf32> to vector<24x1xf32>
    %cst_28 = arith.constant 1.000000e-24 : f32
    %42 = vector.broadcast %cst_28 : f32 to vector<24x1xf32>
    %43 = arith.maximumf %41, %42 : vector<24x1xf32>
    %44 = math.rsqrt %43 : vector<24x1xf32>
    %45 = vector.broadcast %44 : vector<24x1xf32> to vector<24x32xf32>
    %46 = arith.mulf %30, %45 : vector<24x32xf32>
    %c0_29 = arith.constant 0 : index
    %c0_30 = arith.constant 0 : index
    %47 = vector.load %arg6[%c0_29, %c0_30] : memref<32x32xf32, #tpu.memory_space<vmem>>, vector<32x32xf32>
    %cst_31 = arith.constant dense<0.000000e+00> : vector<24x32xf32>
    %48 = tpu.matmul %38, %47, %cst_31 {dimension_numbers = #tpu.dot_dimension_numbers<[1], [0], [0], [1], [0, 0, 1, 1], [], []>} : vector<24x32xf32>, vector<32x32xf32>, vector<24x32xf32> -> vector<24x32xf32>
    %c0_32 = arith.constant 0 : index
    %c0_33 = arith.constant 0 : index
    %49 = vector.load %arg7[%c0_32, %c0_33] : memref<32x32xf32, #tpu.memory_space<vmem>>, vector<32x32xf32>
    %cst_34 = arith.constant dense<0.000000e+00> : vector<24x32xf32>
    %50 = tpu.matmul %46, %49, %cst_34 {dimension_numbers = #tpu.dot_dimension_numbers<[1], [0], [0], [1], [0, 0, 1, 1], [], []>} : vector<24x32xf32>, vector<32x32xf32>, vector<24x32xf32> -> vector<24x32xf32>
    %51 = arith.addf %48, %50 : vector<24x32xf32>
    %c0_35 = arith.constant 0 : index
    %c0_36 = arith.constant 0 : index
    %52 = vector.load %arg8[%c0_35, %c0_36] : memref<1x32xf32, #tpu.memory_space<vmem>>, vector<1x32xf32>
    %53 = vector.broadcast %52 : vector<1x32xf32> to vector<24x32xf32>
    %54 = arith.addf %51, %53 : vector<24x32xf32>
    %cst_37 = arith.constant 0.000000e+00 : f32
    %55 = vector.broadcast %cst_37 : f32 to vector<24x32xf32>
    %56 = arith.maximumf %54, %55 : vector<24x32xf32>
    %c0_38 = arith.constant 0 : index
    %c0_39 = arith.constant 0 : index
    %57 = vector.load %arg9[%c0_38, %c0_39] : memref<1x32xf32, #tpu.memory_space<vmem>>, vector<1x32xf32>
    %58 = vector.broadcast %57 : vector<1x32xf32> to vector<24x32xf32>
    %59 = arith.mulf %56, %58 : vector<24x32xf32>
    %cst_40 = arith.constant dense<0.000000e+00> : vector<24xf32>
    %60 = vector.multi_reduction <add>, %59, %cst_40 [1] : vector<24x32xf32> to vector<24xf32>
    %61 = vector.shape_cast %60 : vector<24xf32> to vector<24x1xf32>
    %c0_41 = arith.constant 0 : index
    %c0_42 = arith.constant 0 : index
    %62 = vector.load %arg10[%c0_41, %c0_42] : memref<1x1xf32, #tpu.memory_space<vmem>>, vector<1x1xf32>
    %63 = vector.broadcast %62 : vector<1x1xf32> to vector<24x1xf32>
    %64 = arith.addf %61, %63 : vector<24x1xf32>
    %c0_43 = arith.constant 0 : index
    %c0_44 = arith.constant 0 : index
    %65 = vector.load %arg11[%c0_43, %c0_44] : memref<24x1xf32, #tpu.memory_space<vmem>>, vector<24x1xf32>
    tpu.vector_store %arg11[%c0_43, %c0_44], %64 {strides = array<i32>} : memref<24x1xf32, #tpu.memory_space<vmem>>, vector<24x1xf32>,
    %cst_45 = arith.constant 0.000000e+00 : f32
    %66 = vector.broadcast %cst_45 : f32 to vector<1x32xf32>
    %cst_46 = arith.constant 0.000000e+00 : f32
    %67 = vector.broadcast %cst_46 : f32 to vector<1x32xf32>
    %68 = vector.extract_strided_slice %26 {offsets = [0, 0], sizes = [1, 32], strides = [1, 1]} : vector<32x32xf32> to vector<1x32xf32>
    %69 = arith.addf %66, %68 : vector<1x32xf32>
    %70 = vector.extract_strided_slice %26 {offsets = [1, 0], sizes = [7, 32], strides = [1, 1]} : vector<32x32xf32> to vector<7x32xf32>
    %cst_47 = arith.constant dense<0.000000e+00> : vector<32xf32>
    %71 = vector.multi_reduction <add>, %70, %cst_47 [0] : vector<7x32xf32> to vector<32xf32>
    %72 = vector.shape_cast %71 : vector<32xf32> to vector<1x32xf32>
    %73 = arith.addf %67, %72 : vector<1x32xf32>
    %74 = vector.extract_strided_slice %26 {offsets = [8, 0], sizes = [1, 32], strides = [1, 1]} : vector<32x32xf32> to vector<1x32xf32>
    %75 = arith.addf %69, %74 : vector<1x32xf32>
    %76 = vector.extract_strided_slice %26 {offsets = [9, 0], sizes = [7, 32], strides = [1, 1]} : vector<32x32xf32> to vector<7x32xf32>
    %cst_48 = arith.constant dense<0.000000e+00> : vector<32xf32>
    %77 = vector.multi_reduction <add>, %76, %cst_48 [0] : vector<7x32xf32> to vector<32xf32>
    %78 = vector.shape_cast %77 : vector<32xf32> to vector<1x32xf32>
    %79 = arith.addf %73, %78 : vector<1x32xf32>
    %cst_49 = arith.constant 5.000000e-01 : f32
    %80 = vector.broadcast %cst_49 : f32 to vector<1x32xf32>
    %81 = arith.mulf %75, %80 : vector<1x32xf32>
    %cst_50 = arith.constant 0.0714285746 : f32
    %82 = vector.broadcast %cst_50 : f32 to vector<1x32xf32>
    %83 = arith.mulf %79, %82 : vector<1x32xf32>
    %84 = arith.addf %81, %83 : vector<1x32xf32>
    %c0_51 = arith.constant 0 : index
    %c0_52 = arith.constant 0 : index
    %85 = vector.load %arg12[%c0_51, %c0_52] : memref<2x32xf32, #tpu.memory_space<vmem>>, vector<1x32xf32>
    tpu.vector_store %arg12[%c0_51, %c0_52], %84 {strides = array<i32>} : memref<2x32xf32, #tpu.memory_space<vmem>>, vector<1x32xf32>,
    %cst_53 = arith.constant 0.000000e+00 : f32
    %86 = vector.broadcast %cst_53 : f32 to vector<1x32xf32>
    %cst_54 = arith.constant 0.000000e+00 : f32
    %87 = vector.broadcast %cst_54 : f32 to vector<1x32xf32>
    %88 = vector.extract_strided_slice %26 {offsets = [16, 0], sizes = [1, 32], strides = [1, 1]} : vector<32x32xf32> to vector<1x32xf32>
    %89 = arith.addf %86, %88 : vector<1x32xf32>
    %90 = vector.extract_strided_slice %26 {offsets = [17, 0], sizes = [7, 32], strides = [1, 1]} : vector<32x32xf32> to vector<7x32xf32>
    %cst_55 = arith.constant dense<0.000000e+00> : vector<32xf32>
    %91 = vector.multi_reduction <add>, %90, %cst_55 [0] : vector<7x32xf32> to vector<32xf32>
    %92 = vector.shape_cast %91 : vector<32xf32> to vector<1x32xf32>
    %93 = arith.addf %87, %92 : vector<1x32xf32>
    %94 = vector.extract_strided_slice %26 {offsets = [24, 0], sizes = [1, 32], strides = [1, 1]} : vector<32x32xf32> to vector<1x32xf32>
    %95 = arith.addf %89, %94 : vector<1x32xf32>
    %96 = vector.extract_strided_slice %26 {offsets = [25, 0], sizes = [7, 32], strides = [1, 1]} : vector<32x32xf32> to vector<7x32xf32>
    %cst_56 = arith.constant dense<0.000000e+00> : vector<32xf32>
    %97 = vector.multi_reduction <add>, %96, %cst_56 [0] : vector<7x32xf32> to vector<32xf32>
    %98 = vector.shape_cast %97 : vector<32xf32> to vector<1x32xf32>
    %99 = arith.addf %93, %98 : vector<1x32xf32>
    %cst_57 = arith.constant 5.000000e-01 : f32
    %100 = vector.broadcast %cst_57 : f32 to vector<1x32xf32>
    %101 = arith.mulf %95, %100 : vector<1x32xf32>
    %cst_58 = arith.constant 0.0714285746 : f32
    %102 = vector.broadcast %cst_58 : f32 to vector<1x32xf32>
    %103 = arith.mulf %99, %102 : vector<1x32xf32>
    %104 = arith.addf %101, %103 : vector<1x32xf32>
    %c1_59 = arith.constant 1 : index
    %c0_60 = arith.constant 0 : index
    %105 = vector.load %arg12[%c1_59, %c0_60] : memref<2x32xf32, #tpu.memory_space<vmem>>, vector<1x32xf32>
    tpu.vector_store %arg12[%c1_59, %c0_60], %104 {strides = array<i32>} : memref<2x32xf32, #tpu.memory_space<vmem>>, vector<1x32xf32>,
    return
  }
}

</mosaic_0001>

<bundles_post_ra>
// kernel: forward_inductive.1
= control target key start
LH: loop header
LB: loop body
LE: loop exit
PB: predicated region body
PF: predicated region fallthrough
CT: control target
= control target key end

     0   :  { %s1291_s0 = inlined_call_operand.vmem [shape: f32[28,32], index: 0, kind: input, shape index: {}]   ;;  %s1292_s1 = inlined_call_operand.vmem [shape: f32[2,32], index: 1, kind: input, shape index: {}]   ;;  %s1293_s2 = inlined_call_operand.vmem [shape: f32[32,32], index: 2, kind: input, shape index: {}]   ;;  %s1294_s3 = inlined_call_operand.vmem [shape: f32[1,32], index: 3, kind: input, shape index: {}]   ;;  %s1295_s4 = inlined_call_operand.vmem [shape: f32[24,32], index: 4, kind: input, shape index: {}]   ;;  %s1296_s5 = inlined_call_operand.vmem [shape: f32[24,32], index: 5, kind: input, shape index: {}]   ;;  %s1297_s6 = inlined_call_operand.vmem [shape: f32[32,32], index: 6, kind: input, shape index: {}]   ;;  %s1298_s7 = inlined_call_operand.vmem [shape: f32[32,32], index: 7, kind: input, shape index: {}]   ;;  %s1299_s8 = inlined_call_operand.vmem [shape: f32[1,32], index: 8, kind: input, shape index: {}]   ;;  %s1300_s9 = inlined_call_operand.vmem [shape: f32[1,32], index: 9, kind: input, shape index: {}]   ;;  %s1301_s10 = inlined_call_operand.<no memory space> [shape: f32[1,1], index: 10, kind: input, shape index: {}]   ;;  %s1302_s11 = inlined_call_operand.vmem [shape: f32[24,1], index: 11, kind: output, shape index: {0}]   ;;  %s1303_s12 = inlined_call_operand.hbm [shape: f32[2,32], index: 12, kind: output, shape index: {1}]  }
   0x1   :  { %v18_v0 = vstv %s1301_s10 }
   0x2   :  { %19 = vst [vmem:[#allocation3] sm:$0x1] %v18_v0 }
   0x3   :  { %v43_v1 = vld [vmem:[%s1293_s2] sm:$0xff]  ;;  %v44_v2 = vld [vmem:[%s1293_s2 + $0x8] sm:$0xff]  ;;  %v45_v3 = vld [vmem:[%s1293_s2 + $0x10] sm:$0xff]  ;;  %vm58_vm0 = vcmask 261120   ;;  %v1019_v5 = vmov 0.0|0.0   ;;  %vm1020_vm1 = vmmov 0  }
   0x4   :  { %v941_v4 = vpack.c.bf16 %v44_v2, %v43_v1  ;;  %949 = vmatprep.subr.bf16.mxu1 %v1019_v5  ;;  %v46_v6 = vld [vmem:[%s1293_s2 + $0x18] sm:$0xff]  ;;  %v48_v7 = vld [vmem:[%s1291_s0] sm:$0xff]  ;;  %v1021_v9 = vmov 0.0  }
   0x5   :  { %v945_v8 = vpack.c.bf16 %v46_v6, %v45_v3  ;;  %856 = vmatprep.mubr.msk.f32.mxu0 %vm58_vm0, %v48_v7  ;;  %870 = vmatprep.mubr.msk.f32.mxu1 %vm1020_vm1, %v1021_v9 }
   0x6   :  { %942 = vmatprep.subr.bf16.mxu0 %v941_v4  ;;  %951 = vmatpush3.bf16.msra.mxu1 %v941_v4 }
   0x7   :  { %20 = vsyncpa [#allocation5], 0  ;;  %944 = vmatpush3.bf16.msra.mxu0 %v941_v4  ;;  %952 = vmatprep.subr.bf16.mxu1 %v1019_v5  ;;  %v156_v10 = vld [vmem:[%s1292_s1] sm:$0x3]  ;;  %v49_v11 = vld [vmem:[%s1291_s0 + $0x8] sm:$0xff]  ;;  %vm230_vm2 = vcmask 253952  }
   0x8   :  { %946 = vmatprep.subr.bf16.mxu0 %v945_v8  ;;  %v50_v12 = vld [vmem:[%s1291_s0 + $0x10] sm:$0xff]  ;;  %v51_v13 = vld [vmem:[%s1291_s0 + $0x18] sm:$0xf]  ;;  %v786_v14 = vld [vmem:[%s1294_s3] ss:$0 sm:$0xff]  ;;  %vm239_vm3 = vcmask 254977  }
   0x9   :  { %vm237_vm4 = vcmask 259072   ;;  %vm241_vm5 = vcmask 261126   ;;  %vm232_vm6 = vcmask 260096   ;;  %vm235_vm7 = vcmask 261127   ;;  %v254_v44 = vld [vmem:[%s1295_s4] sm:$0xff]  ;;  %v255_v53 = vld [vmem:[%s1295_s4 + $0x8] sm:$0xff] }
   0xa   :  { %954 = vmatpush3.bf16.msra.mxu1 %v945_v8  ;;  %vm248_vm8 = vcmask 257024   ;;  %vm243_vm9 = vcmask 258048   ;;  %vm246_vm10 = vcmask 261125   ;;  %v346_v45 = vld [vmem:[%s1296_s5] sm:$0xff]  ;;  %v347_v54 = vld [vmem:[%s1296_s5 + $0x8] sm:$0xff]  ;;  %v256_v0 = vld [vmem:[%s1295_s4 + $0x10] sm:$0xff] }
   0xb   :  { %948 = vmatpush3.bf16.msra.mxu0 %v945_v8  ;;  %961 = vmatprep.subr.bf16.mxu1 %v1019_v5  ;;  %v348_v1 = vld [vmem:[%s1296_s5 + $0x10] sm:$0xff] }
   0xc   :  { %955 = vmatprep.subr.bf16.mxu0 %v1019_v5 }
   0xd   :  { %871 = vmatmul.mubr.msk.f32.vlgmr.msra.gmra.mrb[0].mxu1 %vm58_vm0, %v156_v10 }
   0xe   :  { %857 = vmatmul.mubr.msk.f32.vlgmr.msra.gmra.mrb[0].mxu0 %vm58_vm0, %v49_v11  ;;  %898 = vmatprep.mubr.msk.f32.mxu1 %vm1020_vm1, %v1021_v9 }
   0xf   :  { %859 = vmatprep.mubr.msk.f32.mxu0 %vm58_vm0, %v50_v12 }
  0x12   :  { %860 = vmatmul.mubr.msk.f32.gmra.mrb[2].mxu0 %vm58_vm0, %v51_v13 }
  0x13   :  { %881 = vmatprep.mubr.msk.f32.mxu0 %vm1020_vm1, %v1021_v9 }
  0xe0   :  { %v226_v15 = vpop.f32.mrb[0].mxu1 }
  0xe1   :  { %v858_v16 = vpop.f32.mrb[0].mxu0  ;;  %v227_v17 = vadd.f32 %v786_v14, %v226_v15  ;;  %v872_v18 = vpop.f32.mrb[1].mxu1 }
  0xe2   :  { %v143_v19 = vadd.f32 %v858_v16, %v786_v14  ;;  %v137_v20 = vpop.f32.mrb[1].mxu0 }
  0xe3   :  { %231 = vst.msk [vmem:[#allocation2] sm:$0x1] %vm230_vm2, %v227_v17  ;;  %234 = vst.msk [vmem:[#allocation2 + $0x8] sm:$0x1] %vm230_vm2, %v227_v17  ;;  %v138_v21 = vadd.f32 %v786_v14, %v137_v20 }
  0xe4   :  { %240 = vst.msk [vmem:[#allocation2 + $0xf] sm:$0x2] %vm239_vm3, %v227_v17  ;;  %245 = vst.msk [vmem:[#allocation2 + $0x17] sm:$0x2] %vm239_vm3, %v227_v17 }
  0xe5   :  { %238 = vst.msk [vmem:[#allocation2 + $0xa] sm:$0x3f] %vm237_vm4, %v143_v19  ;;  %v861_v22 = vpop.f32.mrb[2].mxu0 }
  0xe6   :  { %242 = vst.msk [vmem:[#allocation2 + $0xb] sm:$0xc0] %vm241_vm5, %v143_v19  ;;  %v153_v23 = vadd.f32 %v861_v22, %v786_v14  ;;  %v147_v24 = vpop.f32.mrb[3].mxu0 }
  0xe7   :  { %233 = vst.msk [vmem:[#allocation2 + $0x1] sm:$0x7f] %vm232_vm6, %v138_v21  ;;  %v148_v25 = vadd.f32 %v786_v14, %v147_v24 }
  0xe8   :  { %236 = vst.msk [vmem:[#allocation2 + $0x2] sm:$0x80] %vm235_vm7, %v138_v21 }
  0xe9   :  { %249 = vst.msk [vmem:[#allocation2 + $0x1c] sm:$0xf] %vm248_vm8, %v153_v23 }
  0xea   :  { %244 = vst.msk [vmem:[#allocation2 + $0x13] sm:$0x1f] %vm243_vm9, %v148_v25 }
  0xeb   :  { %247 = vst.msk [vmem:[#allocation2 + $0x14] sm:$0xe0] %vm246_vm10, %v148_v25 }
  0xee   :  { %v250_v26 = vld [vmem:[#allocation2] sm:$0xff] }
  0xef   :  { %v251_v27 = vld [vmem:[#allocation2 + $0x8] sm:$0xff]  ;;  %v714_v29 = vrot.slane %v250_v26, 1 }
  0xf0   :  { %v956_v28 = vpack.c.bf16 %v251_v27, %v250_v26  ;;  %v726_v30 = vrot.slane %v251_v27, 1  ;;  %v724_v59 = vadd.f32 %v251_v27, %v250_v26 }
  0xf1   :  { %v716_v31 = vsel %vm232_vm6, %v714_v29, 0.0  ;;  %v252_v35 = vld [vmem:[#allocation2 + $0x10] sm:$0xff] }
  0xf2   :  { %957 = vmatpush3.bf16.msra.mxu0 %v956_v28  ;;  %v728_v32 = vsel %vm232_vm6, %v726_v30, 0.0  ;;  %963 = vmatpush3.bf16.msra.mxu1 %v956_v28  ;;  %v717_v33 = vrot.slane %v716_v31, 4  ;;  %v253_v36 = vld [vmem:[#allocation2 + $0x18] sm:$0xff]  ;;  %v742_v38 = vrot.slane %v252_v35, 1  ;;  %v736_v7 = vmul.f32 0.5, %v724_v59 }
  0xf3   :  { %v729_v34 = vrot.slane %v728_v32, 4  ;;  %958 = vmatprep.subr.bf16.mxu0 %v1019_v5  ;;  %964 = vmatprep.subr.bf16.mxu1 %v1019_v5  ;;  %v959_v37 = vpack.c.bf16 %v253_v36, %v252_v35  ;;  %v754_v39 = vrot.slane %v253_v36, 1  ;;  %v752_v11 = vadd.f32 %v253_v36, %v252_v35 }
  0xf4   :  { %v718_v40 = vadd.f32 %v717_v33, %v716_v31  ;;  %v744_v42 = vsel %vm232_vm6, %v742_v38, 0.0 }
  0xf5   :  { %v730_v41 = vadd.f32 %v729_v34, %v728_v32  ;;  %v756_v43 = vsel %vm232_vm6, %v754_v39, 0.0  ;;  %v745_v46 = vrot.slane %v744_v42, 4  ;;  %v764_v15 = vmul.f32 0.5, %v752_v11 }
  0xf6   :  { %960 = vmatpush3.bf16.msra.mxu0 %v959_v37  ;;  %966 = vmatpush3.bf16.msra.mxu1 %v959_v37  ;;  %v757_v47 = vrot.slane %v756_v43, 4  ;;  %v719_v48 = vrot.slane %v718_v40, 2 }
  0xf7   :  { %967 = vmatprep.subr.bf16.mxu0 %v1019_v5  ;;  %973 = vmatprep.subr.bf16.mxu1 %v1019_v5  ;;  %v731_v49 = vrot.slane %v730_v41, 2  ;;  %v746_v52 = vadd.f32 %v745_v46, %v744_v42  ;;  %v480_v42 = vld [vmem:[%s1297_s6] sm:$0xff]  ;;  %v485_v46 = vld [vmem:[%s1298_s7 + $0x8] sm:$0xff] }
  0xf8   :  { %v720_v50 = vadd.f32 %v719_v48, %v718_v40  ;;  %v758_v55 = vadd.f32 %v757_v47, %v756_v43  ;;  %v481_v43 = vld [vmem:[%s1297_s6 + $0x8] sm:$0xff]  ;;  %v482_v47 = vld [vmem:[%s1297_s6 + $0x10] sm:$0xff] }
  0xf9   :  { %882 = vmatmul.mubr.msk.f32.vlgmr.msra.gmra.mrb[4].mxu0 %vm58_vm0, %v254_v44  ;;  %899 = vmatmul.mubr.msk.f32.vlgmr.msra.gmra.mrb[2].mxu1 %vm58_vm0, %v346_v45  ;;  %v732_v51 = vadd.f32 %v731_v49, %v730_v41  ;;  %v747_v58 = vrot.slane %v746_v52, 2  ;;  %v974_v44 = vpack.c.bf16 %v481_v43, %v480_v42  ;;  %v484_v45 = vld [vmem:[%s1298_s7] sm:$0xff]  ;;  %v483_v49 = vld [vmem:[%s1297_s6 + $0x18] sm:$0xff] }
  0xfa   :  { %884 = vmatprep.mubr.msk.f32.mxu0 %vm1020_vm1, %v1021_v9  ;;  %901 = vmatprep.mubr.msk.f32.mxu1 %vm1020_vm1, %v1021_v9  ;;  %v721_v56 = vrot.slane %v720_v50, 1  ;;  %v759_v60 = vrot.slane %v758_v55, 2  ;;  %v968_v48 = vpack.c.bf16 %v485_v46, %v484_v45 }
  0xfb   :  { %v733_v57 = vrot.slane %v732_v51, 1  ;;  %v748_v63 = vadd.f32 %v747_v58, %v746_v52  ;;  %975 = vmatpush3.bf16.msra.mxu1 %v974_v44  ;;  %v487_v52 = vld [vmem:[%s1298_s7 + $0x18] sm:$0xff] }
  0xfc   :  { %v722_v61 = vadd.f32 %v721_v56, %v720_v50  ;;  %v760_v2 = vadd.f32 %v759_v60, %v758_v55  ;;  %976 = vmatprep.subr.bf16.mxu1 %v1019_v5  ;;  %v977_v50 = vpack.c.bf16 %v483_v49, %v482_v47  ;;  %969 = vmatpush3.bf16.msra.mxu0 %v968_v48 }
  0xfd   :  { %885 = vmatmul.mubr.msk.f32.gmra.mrb[6].mxu0 %vm58_vm0, %v255_v53  ;;  %902 = vmatmul.mubr.msk.f32.gmra.mrb[4].mxu1 %vm58_vm0, %v347_v54  ;;  %v734_v62 = vadd.f32 %v733_v57, %v732_v51  ;;  %v749_v4 = vrot.slane %v748_v63, 1  ;;  %v486_v51 = vld [vmem:[%s1298_s7 + $0x10] sm:$0xff] }
  0xfe   :  { %887 = vmatprep.mubr.msk.f32.mxu0 %vm1020_vm1, %v1021_v9  ;;  %904 = vmatprep.mubr.msk.f32.mxu1 %vm1020_vm1, %v1021_v9  ;;  %v761_v6 = vrot.slane %v760_v2, 1  ;;  %v971_v53 = vpack.c.bf16 %v487_v52, %v486_v51 }
  0xff   :  { %v735_v3 = vadd.f32 %v734_v62, %v722_v61  ;;  %v750_v10 = vadd.f32 %v749_v4, %v748_v63  ;;  %978 = vmatpush3.bf16.msra.mxu1 %v977_v50  ;;  %970 = vmatprep.subr.bf16.mxu0 %v1019_v5 }
 0x100   :  { %v762_v12 = vadd.f32 %v761_v6, %v760_v2  ;;  %972 = vmatpush3.bf16.msra.mxu0 %v971_v53 }
 0x101   :  { %888 = vmatmul.mubr.msk.f32.gmra.mrb[8].mxu0 %vm58_vm0, %v256_v0  ;;  %905 = vmatmul.mubr.msk.f32.gmra.mrb[6].mxu1 %vm58_vm0, %v348_v1  ;;  %v737_v8 = vmul.f32 0.071428575, %v735_v3 }
 0x102   :  { %932 = vmatprep.mubr.msk.f32.mxu1 %vm1020_vm1, %v1021_v9  ;;  %915 = vmatprep.mubr.msk.f32.mxu0 %vm1020_vm1, %v1021_v9  ;;  %v763_v14 = vadd.f32 %v762_v12, %v750_v10 }
 0x103   :  { %v738_v13 = vadd.f32 %v737_v8, %v736_v7 }
 0x104   :  { %v765_v16 = vmul.f32 0.071428575, %v763_v14 }
 0x105   :  { %739 = vst.msk [vmem:[#allocation4] sm:$0x1] %vm230_vm2, %v738_v13 }
 0x106   :  { %v766_v17 = vadd.f32 %v765_v16, %v764_v15 }
 0x108   :  { %767 = vst.msk [vmem:[#allocation4 + $0x1] sm:$0x1] %vm230_vm2, %v766_v17 }
 0x1cc   :  { %v1185_v18 = vpop.f32.mrb[4].mxu0  ;;  %v1187_v19 = vpop.f32.mrb[2].mxu1 }
 0x1cd   :  { %v883_v20 = vpop.f32.mrb[5].mxu0  ;;  %v459_v21 = vmul.f32 %v1187_v19, %v1187_v19  ;;  %v438_v22 = vmul.f32 %v1185_v18, %v1185_v18  ;;  %v900_v23 = vpop.f32.mrb[3].mxu1 }
 0x1cf   :  { %v441_v24 = vsel %vm58_vm0, %v438_v22, 0.0  ;;  %v462_v29 = vsel %vm58_vm0, %v459_v21, 0.0 }
 0x1d0   :  { %442 = vadd.xlane.f32.xlu0 %v441_v24  ;;  %v1194_v25 = vpop.f32.mrb[6].mxu0  ;;  %v1196_v26 = vpop.f32.mrb[4].mxu1 }
 0x1d1   :  { %v886_v27 = vpop.f32.mrb[7].mxu0  ;;  %v460_v28 = vmul.f32 %v1196_v26, %v1196_v26  ;;  %v439_v30 = vmul.f32 %v1194_v25, %v1194_v25  ;;  %v903_v31 = vpop.f32.mrb[5].mxu1 }
 0x1d3   :  { %v444_v32 = vsel %vm58_vm0, %v439_v30, 0.0  ;;  %v465_v37 = vsel %vm58_vm0, %v460_v28, 0.0 }
 0x1d4   :  { %463 = vadd.xlane.f32.xlu0 %v462_v29  ;;  %445 = vadd.xlane.f32.xlu1 %v444_v32  ;;  %v1204_v33 = vpop.f32.mrb[8].mxu0  ;;  %v1206_v34 = vpop.f32.mrb[6].mxu1 }
 0x1d5   :  { %v440_v35 = vmul.f32 %v1204_v33, %v1204_v33  ;;  %v461_v36 = vmul.f32 %v1206_v34, %v1206_v34  ;;  %v889_v38 = vpop.f32.mrb[9].mxu0  ;;  %v906_v39 = vpop.f32.mrb[7].mxu1 }
 0x1d7   :  { %v447_v40 = vsel %vm58_vm0, %v440_v35, 0.0  ;;  %v468_v41 = vsel %vm58_vm0, %v461_v36, 0.0 }
 0x1d8   :  { %466 = vadd.xlane.f32.xlu1 %v465_v37  ;;  %448 = vadd.xlane.f32.xlu0 %v447_v40 }
 0x1dc   :  { %469 = vadd.xlane.f32.xlu1 %v468_v41 }
 0x25d   :  { %v443_v54 = vpop.xlane.xlu0 %442 }
 0x25e   :  { %v450_v55 = vmax.f32 %v443_v54, 1e-24 }
 0x260   :  { %983 = vrsqrt.f32 %v450_v55 }
 0x261   :  { %v464_v56 = vpop.xlane.xlu0 %463  ;;  %v446_v57 = vpop.xlane.xlu1 %445 }
 0x262   :  { %v471_v58 = vmax.f32 %v464_v56, 1e-24  ;;  %v451_v59 = vmax.f32 %v446_v57, 1e-24 }
 0x264   :  { %985 = vrsqrt.f32 %v471_v58 }
 0x265   :  { %987 = vrsqrt.f32 %v451_v59  ;;  %v467_v5 = vpop.xlane.xlu1 %466  ;;  %v449_v60 = vpop.xlane.xlu0 %448 }
 0x266   :  { %v472_v61 = vmax.f32 %v467_v5, 1e-24  ;;  %v452_v62 = vmax.f32 %v449_v60, 1e-24 }
 0x268   :  { %989 = vrsqrt.f32 %v472_v61 }
 0x269   :  { %991 = vrsqrt.f32 %v452_v62  ;;  %v470_v63 = vpop.xlane.xlu1 %469 }
 0x26a   :  { %v984_v0 = vpop.eup %983  ;;  %v473_v1 = vmax.f32 %v470_v63, 1e-24 }
 0x26b   :  { %v456_v2 = vmul.f32 %v984_v0, %v1185_v18  ;;  %v804_v18 = vld [vmem:[%s1299_s8] ss:$0 sm:$0xff]  ;;  %s1022_s8 = smov [#allocation4]  }
 0x26c   :  { %993 = vrsqrt.f32 %v473_v1 }
 0x26d   :  { %933 = vmatmul.mubr.msk.f32.vlgmr.msra.gmra.mrb[8].mxu1 %vm58_vm0, %v456_v2 }
 0x26e   :  { %v986_v3 = vpop.eup %985  ;;  %935 = vmatprep.mubr.msk.f32.mxu1 %vm1020_vm1, %v1021_v9 }
 0x26f   :  { %v988_v4 = vpop.eup %987  ;;  %v477_v6 = vmul.f32 %v986_v3, %v1187_v19 }
 0x270   :  { %v457_v7 = vmul.f32 %v988_v4, %v1194_v25 }
 0x271   :  { %916 = vmatmul.mubr.msk.f32.vlgmr.msra.gmra.mrb[10].mxu0 %vm58_vm0, %v477_v6 }
 0x272   :  { %v990_v8 = vpop.eup %989  ;;  %936 = vmatmul.mubr.msk.f32.gmra.mrb[10].mxu1 %vm58_vm0, %v457_v7  ;;  %918 = vmatprep.mubr.msk.f32.mxu0 %vm1020_vm1, %v1021_v9 }
 0x273   :  { %v992_v10 = vpop.eup %991  ;;  %938 = vmatprep.mubr.msk.f32.mxu1 %vm1020_vm1, %v1021_v9  ;;  %v478_v11 = vmul.f32 %v990_v8, %v1196_v26 }
 0x274   :  { %v458_v12 = vmul.f32 %v992_v10, %v1204_v33 }
 0x275   :  { %919 = vmatmul.mubr.msk.f32.gmra.mrb[12].mxu0 %vm58_vm0, %v478_v11 }
 0x276   :  { %v994_v13 = vpop.eup %993  ;;  %939 = vmatmul.mubr.msk.f32.gmra.mrb[12].mxu1 %vm58_vm0, %v458_v12  ;;  %921 = vmatprep.mubr.msk.f32.mxu0 %vm1020_vm1, %v1021_v9  ;;  %v805_v9 = vld [vmem:[%s1300_s9] ss:$0 sm:$0xff]  ;;  %s776_s9 = sshll.u32 %s1022_s8, 4  ;;  %s777_s9 = int_to_ptr.vmem [resolvable:$true] %s776_s9 }
 0x277   :  { %v479_v14 = vmul.f32 %v994_v13, %v1206_v34  ;;  %s995_s25 = scalar_lea.vmem %s777_s9, 32  ;;  %p1000_p1 = scmp.lt.s32.totalorder %s777_s9, %s777_s9 }
 0x278   :  { %p996_p0 = scmp.ne.s32.totalorder %s777_s9, %s995_s25  ;;  %p1001_p2 = scmp.lt.s32.totalorder %s995_s25, %s995_s25 }
 0x279   :  { %922 = vmatmul.mubr.msk.f32.gmra.mrb[14].mxu0 %vm58_vm0, %v479_v14 }
 0x27a   :  { %p1002_p3 = por %p1001_p2, %p1000_p1 }
 0x27c   :  { %p1003_p4 = pnand %p1002_p3, %p996_p0 }
 0x340   :  { %v652_v15 = vpop.f32.mrb[8].mxu1 }
 0x341   :  { %v934_v16 = vpop.f32.mrb[9].mxu1 }
 0x344   :  { %v563_v17 = vpop.f32.mrb[10].mxu0 }
 0x345   :  { %v653_v19 = vadd.f32 %v652_v15, %v563_v17  ;;  %v657_v20 = vpop.f32.mrb[10].mxu1  ;;  %v917_v21 = vpop.f32.mrb[11].mxu0 }
 0x346   :  { %v937_v22 = vpop.f32.mrb[11].mxu1 }
 0x347   :  { %v673_v23 = vadd.f32 %v804_v18, %v653_v19 }
 0x348   :  { %v568_v24 = vpop.f32.mrb[12].mxu0 }
 0x349   :  { %v676_v25 = vmax.f32 %v673_v23, 0.0  ;;  %v658_v26 = vadd.f32 %v657_v20, %v568_v24  ;;  %v662_v27 = vpop.f32.mrb[12].mxu1  ;;  %v920_v28 = vpop.f32.mrb[13].mxu0 }
 0x34a   :  { %v940_v29 = vpop.f32.mrb[13].mxu1 }
 0x34b   :  { %v674_v30 = vadd.f32 %v804_v18, %v658_v26  ;;  %v686_v31 = vmul.f32 %v805_v9, %v676_v25 }
 0x34c   :  { %v573_v32 = vpop.f32.mrb[14].mxu0 }
 0x34d   :  { %v677_v33 = vmax.f32 %v674_v30, 0.0  ;;  %v663_v34 = vadd.f32 %v662_v27, %v573_v32  ;;  %v923_v35 = vpop.f32.mrb[15].mxu0  ;;  %v689_v36 = vsel %vm58_vm0, %v686_v31, 0.0 }
 0x34e   :  { %690 = vadd.xlane.f32.xlu0 %v689_v36 }
 0x34f   :  { %v675_v37 = vadd.f32 %v804_v18, %v663_v34  ;;  %v687_v38 = vmul.f32 %v805_v9, %v677_v33 }
 0x351   :  { %v678_v39 = vmax.f32 %v675_v37, 0.0  ;;  %v692_v40 = vsel %vm58_vm0, %v687_v38, 0.0 }
 0x352   :  { %693 = vadd.xlane.f32.xlu1 %v692_v40 }
 0x353   :  { %v688_v41 = vmul.f32 %v805_v9, %v678_v39 }
 0x355   :  { %v695_v42 = vsel %vm58_vm0, %v688_v41, 0.0 }
 0x356   :  { %696 = vadd.xlane.f32.xlu0 %v695_v42 }
 0x357   :  { %1006 = shalt.err (!%p1003_p4)
}
 0x358   :  { %s1007_s28 = scalar_lea.hbm %s1303_s12, 32 }
 0x359   :  { %p1008_p5 = scmp.ne.s32.totalorder %s1303_s12, %s1007_s28  ;;  %p1011_p6 = scmp.lt.u32.totalorder %s1007_s28, %s1303_s12 }
 0x35b   :  { %p1013_p7 = pnand %p1011_p6, %p1008_p5 }
 0x35d   :  { %1016 = shalt.err (!%p1013_p7)
}
 0x35e   :  { %779 = dma.vmem_to_hbm [thread:$0]  %s777_s9, 32, %s1303_s12, [#allocation5]   ;;  %v806_v43 = vld [vmem:[#allocation3] ss:$0 sm:$0xff]  ;;  %vm708_vm11 = vcmask 7168  }
 0x3db   :  { %v691_v44 = vpop.xlane.xlu0 %690 }
 0x3dc   :  { %v705_v45 = vadd.f32 %v806_v43, %v691_v44 }
 0x3de   :  { %709 = vst.msk [vmem:[%s1302_s11] sm:$0xff] %vm708_vm11, %v705_v45 }
 0x3df   :  { %v694_v46 = vpop.xlane.xlu1 %693 }
 0x3e0   :  { %v706_v47 = vadd.f32 %v806_v43, %v694_v46 }
 0x3e2   :  { %710 = vst.msk [vmem:[%s1302_s11 + $0x8] sm:$0xff] %vm708_vm11, %v706_v47 }
 0x3e3   :  { %v697_v48 = vpop.xlane.xlu0 %696 }
 0x3e4   :  { %v707_v49 = vadd.f32 %v806_v43, %v697_v48 }
 0x3e6   :  { %711 = vst.msk [vmem:[%s1302_s11 + $0x10] sm:$0xff] %vm708_vm11, %v707_v49 }
 0x3e7   :  { %1017 = dma.done.wait [#allocation5], 32  }
 0x3e8   :  { %1018 = vsyncadd [#allocation5], 4294967264 }
 0x3e9   :  { %785 = vsyncpa [#allocation5], 1 }

</bundles_post_ra>
